<compile_context>
chip_gen: v7x
topology: tpu7x:2x2x1
jax: 0.10.0
libtpu: 0.0.40
codegen_flags: <defaults>
</compile_context>

<pallas_src>
import math

import jax
import jax.numpy as jnp
from jax.experimental import pallas as pl
from jax.experimental.pallas import tpu as pltpu


# -----------------------------------------------------------------------------
# Pallas kernel: out_tile = patches_tile @ W + PE (PE tiled over rows in-kernel)
# -----------------------------------------------------------------------------
def _patch_embed_kernel(patches_ref, w_ref, pe_ref, out_ref):
    # patches_ref: (TM, patch_size)
    # w_ref:       (patch_size, embed_dim)    (resident, constant index_map)
    # pe_ref:      (pe_rows, embed_dim)       (small resident PE period)
    # out_ref:     (TM, embed_dim)
    tm, d = out_ref.shape
    pe_rows = pe_ref.shape[0]
    reps = tm // pe_rows                       # static

    emb = jnp.dot(patches_ref[...], w_ref[...],
                  preferred_element_type=jnp.float32,
                  precision=jax.lax.Precision.HIGHEST)      # (TM, d) f32
    # Broadcast-add the PE period over the row tile.  pe_rows % 8 == 0 and
    # d % 128 == 0 (or d == full dim), so the reshape is layout-preserving.
    emb = emb.reshape(reps, pe_rows, d) + pe_ref[...][None, :, :]
    out_ref[...] = emb.reshape(tm, d).astype(out_ref.dtype)


def _lcm(a, b):
    return a * b // math.gcd(a, b)


def _choose_block_rows(patch_num, total_rows, target=2048):
    """Pick (TM, pe_rows).

    pe_rows = lcm(patch_num, 16): smallest row period that is both a whole
    number of patches and sublane-aligned for f32 AND bf16 outputs.
    TM = k * pe_rows, close to `target` rows but never more than needed.
    """
    period = _lcm(patch_num, 16)
    k_target = max(1, target // period)
    k_fit = max(1, -(-total_rows // period))               # ceil
    return period * min(k_target, k_fit), period


def patch_embed_pallas(patches2d, w_value, pe_block, tm, out_dtype=jnp.float32):
    """patches2d: (rows, patch_size).  w_value: (patch_size, embed_dim).
    pe_block: (pe_rows, embed_dim) one PE period (rows % nothing required --
    partial last grid block is masked).  Returns (rows, embed_dim) out_dtype."""
    rows, ps = patches2d.shape
    d = w_value.shape[1]
    pe_rows = pe_block.shape[0]
    assert tm % pe_rows == 0

    grid = pl.cdiv(rows, tm)                 # partial last block allowed
    out_bytes = jnp.dtype(out_dtype).itemsize

    cost = pl.CostEstimate(
        flops=2 * rows * ps * d,
        transcendentals=0,
        bytes_accessed=(rows * ps + ps * d + pe_rows * d) * 4 + rows * d * out_bytes,
    )

    return pl.pallas_call(
        _patch_embed_kernel,
        out_shape=jax.ShapeDtypeStruct((rows, d), out_dtype),
        grid_spec=pltpu.PrefetchScalarGridSpec(
            num_scalar_prefetch=0,
            grid=(grid,),
            in_specs=[
                pl.BlockSpec((tm, ps), lambda i: (i, 0)),        # row tile
                pl.BlockSpec((ps, d), lambda i: (0, 0)),         # resident weight
                pl.BlockSpec((pe_rows, d), lambda i: (0, 0)),    # tiny resident PE
            ],
            out_specs=pl.BlockSpec((tm, d), lambda i: (i, 0)),
        ),
        compiler_params=pltpu.CompilerParams(
            dimension_semantics=("parallel",),
            # Covers double-buffered (TM, d) output slabs + the f32 matmul
            # intermediate; well under v7x's 64 MiB physical VMEM, above v5e's
            # 16 MiB default scoped limit.
            vmem_limit_bytes=48 * 1024 * 1024,
        ),
        cost_estimate=cost,
    )(patches2d, w_value, pe_block)


# -----------------------------------------------------------------------------
# Module-equivalent wrapper (glue in plain JAX)
# -----------------------------------------------------------------------------
def make_positional_embedding(d_model, max_len=5000):
    position = jnp.arange(0, max_len, dtype=jnp.float32)[:, None]
    div_term = jnp.exp(
        jnp.arange(0, d_model, 2, dtype=jnp.float32)
        * (-math.log(10000.0) / d_model))
    pe = jnp.zeros((max_len, d_model), dtype=jnp.float32)
    pe = pe.at[:, 0::2].set(jnp.sin(position * div_term))
    pe = pe.at[:, 1::2].set(jnp.cos(position * div_term))
    return pe  # (max_len, d_model)


class TimeSeriesPatchEmbedPallas:
    def __init__(self, context_window=96, patch_size=16, stride=8,
                 padding_patch='end', embed_dim=768,
                 out_dtype=jnp.float32, key=None):
        self.context_window = context_window
        self.patch_size = patch_size
        self.stride = stride
        self.padding_patch = padding_patch
        self.embed_dim = embed_dim
        self.out_dtype = out_dtype
        self.patch_num = int((context_window - patch_size) / stride + 1)
        if padding_patch == 'end':
            self.patch_num += 1
        # nn.Linear(patch_size, embed_dim, bias=False) weight stored as
        # (patch_size, embed_dim), so forward is patches @ W.
        if key is None:
            key = jax.random.PRNGKey(0)
        bound = 1.0 / math.sqrt(patch_size)
        self.w_value = jax.random.uniform(
            key, (patch_size, embed_dim), jnp.float32, -bound, bound)
        self.pe_full = make_positional_embedding(embed_dim)

    def _unfold(self, x):
        """ReplicationPad1d((0, stride)) + unfold -> (B*nv, pn, ps)."""
        b, n_vars, L = x.shape
        if self.padding_patch == 'end':
            pad = jnp.repeat(x[..., -1:], self.stride, axis=-1)
            x = jnp.concatenate([x, pad], axis=-1)
        idx = (jnp.arange(self.patch_num)[:, None] * self.stride
               + jnp.arange(self.patch_size)[None, :])
        patches = x[..., idx]                               # (B, nv, pn, ps)
        return patches.reshape(b * n_vars, self.patch_num, self.patch_size)

    def __call__(self, x):
        # x: (B, n_vars, L) float32
        b, n_vars, L = x.shape
        assert L == self.context_window
        pn, ps, d = self.patch_num, self.patch_size, self.embed_dim

        patches = self._unfold(x)                            # (BN, pn, ps)
        bn = patches.shape[0]
        total = bn * pn
        patches2d = patches.reshape(total, ps)               # contiguous

        tm, pe_rows = _choose_block_rows(pn, total)
        # One PE period of pe_rows rows.  Alignment holds because every grid
        # block starts at a multiple of tm, which is a multiple of pn.
        pe_block = jnp.tile(self.pe_full[:pn], (pe_rows // pn, 1))  # (pe_rows, d)

        out2d = patch_embed_pallas(patches2d, self.w_value, pe_block, tm,
                                   out_dtype=self.out_dtype)
        return out2d.reshape(bn, pn, d)

    def reference(self, x):
        """Pure-JAX exact-f32 reference (no MXU), for verification."""
        patches = self._unfold(x)                            # (BN, pn, ps)
        out = (patches[..., :, None] * self.w_value[None, None, :, :]).sum(axis=-2)
        return out + self.pe_full[None, : self.patch_num]


if __name__ == "__main__":
    # Small shapes consistent with the module semantics.
    B, N_VARS = 2, 4
    CONTEXT_WINDOW, PATCH_SIZE, STRIDE, EMBED_DIM = 32, 16, 8, 128
    # patch_num = (32-16)//8 + 1 + 1 = 4

    key = jax.random.PRNGKey(0)
    kx, kw = jax.random.split(key)
    x = jax.random.normal(kx, (B, N_VARS, CONTEXT_WINDOW), dtype=jnp.float32)

    # ---- float32 output: exact module semantics ----
    mod = TimeSeriesPatchEmbedPallas(
        context_window=CONTEXT_WINDOW, patch_size=PATCH_SIZE, stride=STRIDE,
        padding_patch='end', embed_dim=EMBED_DIM,
        out_dtype=jnp.float32, key=kw)

    out = jax.block_until_ready(mod(x))
    ref = mod.reference(x)
    assert out.shape == (B * N_VARS, mod.patch_num, EMBED_DIM), out.shape
    assert out.dtype == jnp.float32
    assert jnp.allclose(out, ref, atol=1e-4, rtol=1e-4), "f32 mismatch vs reference"

    # ---- bfloat16 output: halves the dominant HBM writeback ----
    mod_bf16 = TimeSeriesPatchEmbedPallas(
        context_window=CONTEXT_WINDOW, patch_size=PATCH_SIZE, stride=STRIDE,
        padding_patch='end', embed_dim=EMBED_DIM,
        out_dtype=jnp.bfloat16, key=kw)
    out_bf16 = jax.block_until_ready(mod_bf16(x))
    assert out_bf16.dtype == jnp.bfloat16
    assert jnp.allclose(out_bf16.astype(jnp.float32), ref,
                        atol=5e-2, rtol=5e-2), "bf16 mismatch vs reference"

    print("KERNEL_OK")
</pallas_src>

<mosaic_0001>
module attributes {stable_mosaic.version = 11 : i64} {
  func.func @_patch_embed_kernel(%arg0: i32, %arg1: memref<32x16xf32, #tpu.memory_space<vmem>>, %arg2: memref<16x128xf32, #tpu.memory_space<vmem>>, %arg3: memref<16x128xf32, #tpu.memory_space<vmem>>, %arg4: memref<32x128xf32, #tpu.memory_space<vmem>>) attributes {dimension_semantics = [#tpu.dimension_semantics<parallel>], iteration_bounds = array<i64: 1>, scalar_prefetch = 0 : i64, scratch_operands = 0 : i64, tpu.core_type = #tpu.core_type<tc>, window_params = [{transform_indices = @transform_0, window_bounds = array<i64: 32, 16>}, {pipeline_mode = #tpu.pipeline_mode<synchronous>, transform_indices = @transform_1, window_bounds = array<i64: 16, 128>}, {pipeline_mode = #tpu.pipeline_mode<synchronous>, transform_indices = @transform_2, window_bounds = array<i64: 16, 128>}, {transform_indices = @transform_3, window_bounds = array<i64: 32, 128>}]} {
    %c0 = arith.constant 0 : index
    %c0_0 = arith.constant 0 : index
    %0 = vector.load %arg1[%c0, %c0_0] : memref<32x16xf32, #tpu.memory_space<vmem>>, vector<32x16xf32>
    %c0_1 = arith.constant 0 : index
    %c0_2 = arith.constant 0 : index
    %1 = vector.load %arg2[%c0_1, %c0_2] : memref<16x128xf32, #tpu.memory_space<vmem>>, vector<16x128xf32>
    %cst = arith.constant dense<0.000000e+00> : vector<32x128xf32>
    %2 = tpu.matmul %0, %1, %cst {dimension_numbers = #tpu.dot_dimension_numbers<[1], [0], [0], [1], [0, 0, 1, 1], [], []>, precision = #tpu.contract_precision<fp32>} : vector<32x16xf32>, vector<16x128xf32>, vector<32x128xf32> -> vector<32x128xf32>
    %3 = vector.shape_cast %2 : vector<32x128xf32> to vector<2x16x128xf32>
    %c0_3 = arith.constant 0 : index
    %c0_4 = arith.constant 0 : index
    %4 = vector.load %arg3[%c0_3, %c0_4] : memref<16x128xf32, #tpu.memory_space<vmem>>, vector<16x128xf32>
    %5 = vector.shape_cast %4 : vector<16x128xf32> to vector<1x16x128xf32>
    %6 = vector.broadcast %5 : vector<1x16x128xf32> to vector<2x16x128xf32>
    %7 = arith.addf %3, %6 : vector<2x16x128xf32>
    %8 = vector.shape_cast %7 : vector<2x16x128xf32> to vector<32x128xf32>
    %c0_5 = arith.constant 0 : index
    %c0_6 = arith.constant 0 : index
    %9 = vector.load %arg4[%c0_5, %c0_6] : memref<32x128xf32, #tpu.memory_space<vmem>>, vector<32x128xf32>
    tpu.vector_store %arg4[%c0_5, %c0_6], %8 {strides = array<i32>} : memref<32x128xf32, #tpu.memory_space<vmem>>, vector<32x128xf32>,
    return
  }
  func.func @transform_0(%arg0: i32) -> (i32, i32) {
    %c0_i32 = arith.constant 0 : i32
    %c0_i32_0 = arith.constant 0 : i32
    return %arg0, %c0_i32 : i32, i32
  }
  func.func @transform_1(%arg0: i32) -> (i32, i32) {
    %c0_i32 = arith.constant 0 : i32
    %c0_i32_0 = arith.constant 0 : i32
    %c0_i32_1 = arith.constant 0 : i32
    return %c0_i32, %c0_i32_0 : i32, i32
  }
  func.func @transform_2(%arg0: i32) -> (i32, i32) {
    %c0_i32 = arith.constant 0 : i32
    %c0_i32_0 = arith.constant 0 : i32
    %c0_i32_1 = arith.constant 0 : i32
    return %c0_i32, %c0_i32_0 : i32, i32
  }
  func.func @transform_3(%arg0: i32) -> (i32, i32) {
    %c0_i32 = arith.constant 0 : i32
    %c0_i32_0 = arith.constant 0 : i32
    return %arg0, %c0_i32 : i32, i32
  }
}

</mosaic_0001>

<bundles_post_ra>
// kernel: tpu_custom_call.1
= control target key start
LH: loop header
LB: loop body
LE: loop exit
PB: predicated region body
PF: predicated region fallthrough
CT: control target
= control target key end

     0   :  { %vm21_vm0 = vcmask 130048   ;;  %s874_s0 = inlined_call_operand.vmem [shape: f32[32,16], index: 0, kind: input, shape index: {}]   ;;  %s875_s1 = inlined_call_operand.vmem [shape: f32[16,128], index: 1, kind: input, shape index: {}]   ;;  %s876_s2 = inlined_call_operand.vmem [shape: f32[16,128], index: 2, kind: input, shape index: {}]   ;;  %s877_s3 = inlined_call_operand.hbm [shape: f32[32,128], index: 3, kind: output, shape index: {}]  }
   0x1   :  { %v19_v0 = vld [vmem:[%s875_s1] sm:$0xff]  ;;  %v20_v1 = vld [vmem:[%s875_s1 + $0x8] sm:$0xff]  ;;  %v17_v7 = vld [vmem:[%s874_s0 + $0x10] sm:$0xff] }
   0x2   :  { %v15_v2 = vld [vmem:[%s874_s0] sm:$0xff]  ;;  %v35_v3 = vand.u32 4294901760, %v19_v0  ;;  %v38_v4 = vand.u32 4294901760, %v20_v1  ;;  %v16_v6 = vld [vmem:[%s874_s0 + $0x8] sm:$0xff]  ;;  %v18_v8 = vld [vmem:[%s874_s0 + $0x18] sm:$0xff]  ;;  %v29_v11 = vsel %vm21_vm0, %v17_v7, 0 }
   0x3   :  { %v23_v5 = vsel %vm21_vm0, %v15_v2, 0  ;;  %v26_v10 = vsel %vm21_vm0, %v16_v6, 0  ;;  %v32_v12 = vsel %vm21_vm0, %v18_v8, 0 }
   0x4   :  { %v101_v9 = vand.u32 4294901760, %v23_v5 }
   0x5   :  { %8 = vsyncpa [#allocation3], 0  ;;  %v744_v13 = vpack.c.bf16 %v38_v4, %v35_v3  ;;  %v111_v14 = vand.u32 4294901760, %v26_v10  ;;  %v121_v15 = vand.u32 4294901760, %v29_v11  ;;  %v143_v16 = vsub.f32 %v19_v0, %v35_v3  ;;  %v623_v47 = vld [vmem:[%s876_s2 + $0x8] sm:$0xff]  ;;  %v622_v51 = vld [vmem:[%s876_s2] sm:$0xff] }
   0x6   :  { %v102_v17 = vsub.f32 %v23_v5, %v101_v9  ;;  %v150_v18 = vsub.f32 %v20_v1, %v38_v4  ;;  %v131_v19 = vand.u32 4294901760, %v32_v12  ;;  %s815_s26 = smov [#allocation2]  }
   0x7   :  { %757 = vmatprep.subr.bf16.mxu0 %v744_v13  ;;  %745 = vmatprep.subr.bf16.mxu1 %v744_v13  ;;  %v112_v20 = vsub.f32 %v26_v10, %v111_v14  ;;  %v122_v21 = vsub.f32 %v29_v11, %v121_v15  ;;  %v144_v22 = vand.u32 4294901760, %v143_v16  ;;  %s637_s27 = sshll.u32 %s815_s26, 4  ;;  %s638_s27 = int_to_ptr.vmem [resolvable:$true] %s637_s27 }
   0x8   :  { %759 = vmatpush3.bf16.msra.mxu0 %v744_v13  ;;  %v103_v23 = vand.u32 4294901760, %v102_v17  ;;  %747 = vmatpush3.bf16.msra.mxu1 %v744_v13  ;;  %v151_v24 = vand.u32 4294901760, %v150_v18  ;;  %v132_v25 = vsub.f32 %v32_v12, %v131_v19  ;;  %v752_v42 = vpack.c.bf16 %v150_v18, %v143_v16  ;;  %s791_s28 = scalar_lea.vmem %s638_s27, 512  ;;  %p796_p1 = scmp.lt.s32.totalorder %s638_s27, %s638_s27 }
   0x9   :  { %v113_v26 = vand.u32 4294901760, %v112_v20  ;;  %v123_v27 = vand.u32 4294901760, %v122_v21  ;;  %v145_v28 = vsub.f32 %v143_v16, %v144_v22  ;;  %p792_p0 = scmp.ne.s32.totalorder %s638_s27, %s791_s28  ;;  %p797_p2 = scmp.lt.s32.totalorder %s791_s28, %s791_s28 }
   0xa   :  { %718 = vmatprep.mubr.f32.mxu0 %v103_v23  ;;  %v104_v29 = vsub.f32 %v102_v17, %v103_v23  ;;  %v152_v30 = vsub.f32 %v150_v18, %v151_v24  ;;  %v133_v31 = vand.u32 4294901760, %v132_v25  ;;  %v760_v32 = vpack.c.bf16 %v151_v24, %v144_v22 }
   0xb   :  { %719 = vmatmul.mubr.f32.vlgmr.msra.gmra.mrb[0].mxu0 %v113_v26  ;;  %v114_v33 = vsub.f32 %v112_v20, %v113_v26  ;;  %v146_v34 = vand.u32 4294901760, %v145_v28  ;;  %v124_v35 = vsub.f32 %v122_v21, %v123_v27  ;;  %p798_p3 = por %p797_p2, %p796_p1 }
   0xc   :  { %v105_v36 = vand.u32 4294901760, %v104_v29  ;;  %721 = vmatprep.mubr.f32.mxu0 %v123_v27  ;;  %v153_v37 = vand.u32 4294901760, %v152_v30  ;;  %761 = vmatprep.subr.bf16.mxu0 %v760_v32  ;;  %v134_v38 = vsub.f32 %v132_v25, %v133_v31 }
   0xd   :  { %v115_v39 = vand.u32 4294901760, %v114_v33  ;;  %763 = vmatpush3.bf16.msra.mxu0 %v760_v32  ;;  %v125_v40 = vand.u32 4294901760, %v124_v35  ;;  %p799_p4 = pnand %p798_p3, %p792_p0 }
   0xe   :  { %688 = vmatprep.mubr.f32.mxu1 %v105_v36  ;;  %v748_v41 = vpack.c.bf16 %v153_v37, %v146_v34  ;;  %765 = vmatprep.subr.bf16.mxu0 %v744_v13  ;;  %v135_v43 = vand.u32 4294901760, %v134_v38 }
   0xf   :  { %689 = vmatmul.mubr.f32.vlgmr.msra.gmra.mrb[0].mxu1 %v115_v39  ;;  %722 = vmatmul.mubr.f32.gmra.mrb[2].mxu0 %v133_v31 }
  0x10   :  { %749 = vmatprep.subr.bf16.mxu1 %v748_v41  ;;  %691 = vmatprep.mubr.f32.mxu1 %v125_v40 }
  0x11   :  { %751 = vmatpush3.bf16.msra.mxu1 %v748_v41  ;;  %728 = vmatprep.mubr.f32.mxu0 %v101_v9 }
  0x12   :  { %753 = vmatprep.subr.bf16.mxu1 %v752_v42 }
  0x13   :  { %692 = vmatmul.mubr.f32.gmra.mrb[2].mxu1 %v135_v43  ;;  %729 = vmatmul.mubr.f32.vlgmr.msra.gmra.mrb[0].mxu0 %v111_v14 }
  0x14   :  { %698 = vmatprep.mubr.f32.mxu1 %v101_v9  ;;  %731 = vmatprep.mubr.f32.mxu0 %v121_v15 }
  0x15   :  { %767 = vmatpush3.bf16.msra.mxu0 %v744_v13 }
  0x17   :  { %699 = vmatmul.mubr.f32.vlgmr.msra.gmra.mrb[0].mxu1 %v111_v14  ;;  %732 = vmatmul.mubr.f32.gmra.mrb[2].mxu0 %v131_v19 }
  0x18   :  { %755 = vmatpush3.bf16.msra.mxu1 %v752_v42  ;;  %701 = vmatprep.mubr.f32.mxu1 %v121_v15 }
  0x19   :  { %738 = vmatprep.mubr.f32.mxu0 %v101_v9 }
  0x1b   :  { %702 = vmatmul.mubr.f32.gmra.mrb[2].mxu1 %v131_v19  ;;  %739 = vmatmul.mubr.f32.vlgmr.msra.gmra.mrb[0].mxu0 %v111_v14 }
  0x1c   :  { %708 = vmatprep.mubr.f32.mxu1 %v102_v17  ;;  %741 = vmatprep.mubr.f32.mxu0 %v121_v15 }
  0x1f   :  { %709 = vmatmul.mubr.f32.vlgmr.msra.gmra.mrb[0].mxu1 %v112_v20  ;;  %742 = vmatmul.mubr.f32.gmra.mrb[2].mxu0 %v131_v19 }
  0x20   :  { %711 = vmatprep.mubr.f32.mxu1 %v122_v21 }
  0x23   :  { %712 = vmatmul.mubr.f32.gmra.mrb[2].mxu1 %v132_v25 }
  0xee   :  { %v740_v44 = vpop.f32.mrb[0].mxu0 }
  0xef   :  { %v600_v45 = vpop.f32.mrb[1].mxu0 }
  0xf2   :  { %v710_v46 = vpop.f32.mrb[0].mxu1  ;;  %v743_v48 = vpop.f32.mrb[2].mxu0 }
  0xf3   :  { %v768_v49 = vadd.f32 %v740_v44, %v710_v46  ;;  %v312_v50 = vpop.f32.mrb[1].mxu1  ;;  %v612_v52 = vpop.f32.mrb[3].mxu0 }
  0xf4   :  { %v769_v53 = vadd.f32 %v600_v45, %v312_v50 }
  0xf5   :  { %v625_v54 = vadd.f32 %v768_v49, %v623_v47 }
  0xf6   :  { %v624_v55 = vadd.f32 %v769_v53, %v622_v51  ;;  %v713_v56 = vpop.f32.mrb[2].mxu1 }
  0xf7   :  { %629 = vst [vmem:[#allocation2 + $0x8] sm:$0xff] %v625_v54  ;;  %v770_v57 = vadd.f32 %v743_v48, %v713_v56  ;;  %v326_v58 = vpop.f32.mrb[3].mxu1 }
  0xf8   :  { %628 = vst [vmem:[#allocation2] sm:$0xff] %v624_v55  ;;  %v771_v59 = vadd.f32 %v612_v52, %v326_v58 }
  0xf9   :  { %v627_v60 = vadd.f32 %v770_v57, %v623_v47 }
  0xfa   :  { %v626_v61 = vadd.f32 %v771_v59, %v622_v51 }
  0xfb   :  { %631 = vst [vmem:[#allocation2 + $0x18] sm:$0xff] %v627_v60 }
  0xfc   :  { %630 = vst [vmem:[#allocation2 + $0x10] sm:$0xff] %v626_v61 }
  0xfd   :  { %802 = shalt.err (!%p799_p4)
}
  0xfe   :  { %s803_s30 = scalar_lea.hbm %s877_s3, 512 }
  0xff   :  { %p804_p5 = scmp.ne.s32.totalorder %s877_s3, %s803_s30  ;;  %p807_p6 = scmp.lt.u32.totalorder %s803_s30, %s877_s3 }
 0x101   :  { %p809_p7 = pnand %p807_p6, %p804_p5 }
 0x103   :  { %812 = shalt.err (!%p809_p7)
}
 0x104   :  { %s816_s8 = smov 128   ;;  %s817_s9 = smov 8  }
 0x105   :  { %643 = dma.vmem_to_hbm [thread:$0]  %s638_s27, 512, %s877_s3, [#allocation3], %s816_s8, %s816_s8, %s817_s9  }
 0x106   :  { %813 = dma.done.wait [#allocation3], 512  }
 0x107   :  { %814 = vsyncadd [#allocation3], 4294966784 }
 0x108   :  { %647 = vsyncpa [#allocation3], 1 }

</bundles_post_ra>
